<compile_context>
chip_gen: v6e
topology: v6e:2x2x1
jax: 0.10.0
libtpu: 0.0.40
codegen_flags: <defaults>
</compile_context>

<pallas_src>
import functools

import numpy as np
import jax
import jax.numpy as jnp
from jax.experimental import pallas as pl
from jax.experimental.pallas import tpu as pltpu

_LANE = 128
_MAX_TS = 32 * 1024          # perf review: target ~16K-32K lanes per grid step


# ----------------------------------------------------------------------------
# Pallas kernel: fused softmax + masking + lane-dense accumulation of all sums
# needed by dice_loss, streamed over spatial tiles, split across 2 TensorCores.
# ----------------------------------------------------------------------------
def _dice_sums_kernel(logits_ref, tgt_ref, w_mid_ref, chan_out_ref, scal_out_ref,
                      acc_ref, sacc_ref, *, apply_softmax, dense_target,
                      s_total, n_tiles, n_inner):
    """Per core: accumulates per-channel sums [p*t*ig, p*ig, t*ig, p*t*ig*pm,
    p*ig*pm, t*ig*pm] and spatial-only sums [ig, ig*pm, pm] across its spatial
    tiles.  ig = ignore mask (batch 0), pm = positive-target mask (batch 0)."""
    core = pl.program_id(0)
    i = pl.program_id(1)
    n_c = logits_ref.shape[1]
    ts = logits_ref.shape[2]
    gidx = core * n_inner + i                  # global spatial-tile index

    @pl.when(i == 0)
    def _init():
        acc_ref[...] = jnp.zeros_like(acc_ref)
        sacc_ref[...] = jnp.zeros_like(sacc_ref)

    def _accumulate():
        x = logits_ref[...].astype(jnp.float32)            # (N, C, TS)

        has_tail = (s_total % ts) != 0                     # static Python bool
        if has_tail:
            lane = jax.lax.broadcasted_iota(jnp.int32, (1, 1, ts), 2)
            valid = (gidx * ts + lane) < s_total           # (1, 1, TS)
            x = jnp.where(valid, x, 0.0)                   # sanitize NaN/Inf tails
            vf = valid[0].astype(jnp.float32)              # (1, TS)

        if dense_target:
            tgt = tgt_ref[...]                             # (N, TS) int32
            cls = jax.lax.broadcasted_iota(jnp.int32, (1, n_c, ts), 1)
            t = (tgt[:, None, :] == cls).astype(jnp.float32)   # one-hot (N, C, TS)
            ig = (tgt[0:1, :] != (n_c - 1)).astype(jnp.float32)  # (1, TS)
        else:
            t = tgt_ref[...].astype(jnp.float32)           # (N, C, TS)
            if has_tail:
                t = jnp.where(valid, t, 0.0)               # keep NaN tails out
            ig = 1.0 - t[0, n_c - 1:n_c, :]                # (1, TS)

        # positive-target mask: sum_c weight[c] * onehot[0, c] for c in 1..C-2
        pm = jnp.sum(w_mid_ref[...] * t[0], axis=0, keepdims=True)   # (1, TS)
        if has_tail:
            ig = ig * vf
            pm = pm * vf

        if apply_softmax:
            xm = jnp.max(x, axis=1, keepdims=True)         # (N, 1, TS)
            e = jnp.exp(x - xm)                            # EUP
            r = pl.reciprocal(jnp.sum(e, axis=1, keepdims=True))   # exact, EUP
            nmask = r * ig[None]                           # fold softmax norm into mask
        else:
            e = x
            nmask = ig[None]                               # (1, 1, TS), broadcasts

        # N-first reduction: only two (N,C,TS)-sized multiplies, rest is (C,TS).
        pn = e * nmask                                     # p * ig     (per sample)
        ptn = pn * t                                       # p * t * ig (per sample)
        pig = jnp.sum(pn, axis=0)                          # (C, TS)
        ptig = jnp.sum(ptn, axis=0)                        # (C, TS)
        tig = jnp.sum(t, axis=0) * ig                      # (C, TS)

        acc_ref[0] += ptig
        acc_ref[1] += pig
        acc_ref[2] += tig
        acc_ref[3] += ptig * pm
        acc_ref[4] += pig * pm
        acc_ref[5] += tig * pm

        sacc_ref[0:1, :] += ig
        sacc_ref[1:2, :] += ig * pm
        sacc_ref[2:3, :] += pm

    if n_tiles == 2 * n_inner:          # even split: every (core, i) is a real tile
        _accumulate()
    else:                               # odd split: core 1's last tile is a dummy
        pl.when(gidx < n_tiles)(_accumulate)

    # One-time per-core epilogue: cross-lane reduce the lane-dense accumulators
    # and do the single narrow store of the (1, 6, C, 1) / (1, 3, 1) results.
    @pl.when(i == n_inner - 1)
    def _fin():
        chan_out_ref[...] = jnp.sum(acc_ref[...], axis=-1, keepdims=True)[None]
        scal_out_ref[...] = jnp.sum(sacc_ref[...], axis=-1, keepdims=True)[None]


# ----------------------------------------------------------------------------
# Tile sizing: generation-aware VMEM budget, exact-divisor preference.
# ----------------------------------------------------------------------------
def _physical_vmem_bytes():
    try:
        info = pltpu.get_tpu_info()
        for attr in ("vmem_capacity_bytes", "vmem_size_bytes", "vmem_bytes"):
            v = getattr(info, attr, None)
            if v:
                return int(v)
    except Exception:
        pass
    return 64 << 20            # conservative fallback: v7x per-TensorCore VMEM


def _per_lane_bytes(n, c, logit_itemsize, dense_target, tgt_itemsize):
    c_pad = -(-c // 8) * 8
    n_pad = -(-n // 8) * 8
    lane = 2 * n * c_pad * logit_itemsize            # double-buffered logits blocks
    if dense_target:
        lane += 2 * n_pad * 4                        # double-buffered int32 targets
    else:
        lane += 2 * n * c_pad * tgt_itemsize         # double-buffered one-hot targets
    lane += 6 * c_pad * 4                            # lane-dense channel accumulator
    lane += 8 * 4                                    # spatial scalar accumulator (3->8 pad)
    lane += 4 * (5 * n * c_pad + 8 * c_pad + 6 * n)  # in-kernel elementwise temporaries
    return lane


def _choose_tile(s, per_lane, budget):
    """Full extent if it fits; else the largest 128-multiple under the VMEM
    budget (<= _MAX_TS), preferring one that divides S exactly so that no
    tail-lane masking is traced into the hot loop."""
    cap = (budget // per_lane) // _LANE * _LANE
    cap = max(_LANE, min(cap, _MAX_TS))
    if s <= cap:
        return s                                     # single tile; lane dim == full dim
    cand = cap
    while cand >= _LANE and cand * 4 >= cap:         # accept a divisor within 4x of cap
        if s % cand == 0:
            return cand
        cand -= _LANE
    return cap                                       # fallback: tail handled in-kernel


def _dice_channel_sums(logits_f, tgt_f, w_mid, *, apply_softmax, dense_target,
                       ts=None):
    n, c, s = logits_f.shape
    vmem_cap = _physical_vmem_bytes()
    budget = max(8 << 20, min(int(vmem_cap * 0.35), 40 << 20))
    per_lane = _per_lane_bytes(n, c, logits_f.dtype.itemsize, dense_target,
                               tgt_f.dtype.itemsize)
    if ts is None:
        ts = _choose_tile(s, per_lane, budget)
    ts = min(int(ts), s)
    if ts < s and ts % _LANE != 0:   # lane dim must be a 128-multiple unless full
        ts = max(_LANE, (ts // _LANE) * _LANE)
    n_s = pl.cdiv(s, ts)
    n_inner = pl.cdiv(n_s, 2)        # split spatial tiles across (up to) 2 TensorCores

    def _gidx(core, i):              # clamped global tile index (core 1 may get a dummy)
        return jnp.minimum(core * n_inner + i, n_s - 1)

    if dense_target:
        tgt_spec = pl.BlockSpec((n, ts), lambda core, i: (0, _gidx(core, i)))
    else:
        tgt_spec = pl.BlockSpec((n, c, ts), lambda core, i: (0, 0, _gidx(core, i)))

    kernel = functools.partial(_dice_sums_kernel, apply_softmax=apply_softmax,
                               dense_target=dense_target, s_total=s,
                               n_tiles=n_s, n_inner=n_inner)

    step_bytes = per_lane * ts
    vmem_limit = int(min(max(step_bytes + (8 << 20), 32 << 20), vmem_cap * 3 // 4))

    grid_spec = pltpu.PrefetchScalarGridSpec(
        num_scalar_prefetch=0,
        grid=(2, n_inner),
        in_specs=[
            pl.BlockSpec((n, c, ts), lambda core, i: (0, 0, _gidx(core, i))),
            tgt_spec,
            pl.BlockSpec((c, 1), lambda core, i: (0, 0)),
        ],
        out_specs=[
            pl.BlockSpec((1, 6, c, 1), lambda core, i: (core, 0, 0, 0)),
            pl.BlockSpec((1, 3, 1), lambda core, i: (core, 0, 0)),
        ],
        scratch_shapes=[
            pltpu.VMEM((6, c, ts), jnp.float32),
            pltpu.VMEM((3, ts), jnp.float32),
        ],
    )
    chan, scal = pl.pallas_call(
        kernel,
        out_shape=(jax.ShapeDtypeStruct((2, 6, c, 1), jnp.float32),
                   jax.ShapeDtypeStruct((2, 3, 1), jnp.float32)),
        grid_spec=grid_spec,
        compiler_params=pltpu.CompilerParams(
            dimension_semantics=("parallel", "arbitrary"),
            vmem_limit_bytes=vmem_limit),
    )(logits_f, tgt_f, w_mid)
    # Sum the per-TensorCore slabs.
    return jnp.sum(chan, axis=0), jnp.sum(scal, axis=0)


# ----------------------------------------------------------------------------
# NLDSC loss = -log(1 - dice_loss + 1e-10); per-element hot path in the kernel,
# per-channel scalar algebra in plain JAX glue.
# ----------------------------------------------------------------------------
def nldsc_loss_pallas(output, target, weight, class_weight, apply_softmax=True,
                      ts=None):
    n = int(output.shape[0])
    c = int(output.shape[1])
    spatial = output.shape[2:]
    s = int(np.prod(spatial)) if len(spatial) else 1
    dt = jnp.float32

    # bf16 logits stream as bf16 (upcast happens in-kernel); else cast to f32.
    logits = output if output.dtype == jnp.bfloat16 else output.astype(dt)
    logits_f = logits.reshape(n, c, s)

    weight = jnp.broadcast_to(jnp.asarray(weight, dt), (c,))
    class_weight = jnp.broadcast_to(jnp.asarray(class_weight, dt), (c,))
    # weights used for the positive-target mask (channels 1..C-2, ORIGINAL weight)
    w_mid = weight.at[0].set(0.0).at[c - 1].set(0.0).reshape(c, 1)

    if target.shape == output.shape:                 # already one-hot / soft labels
        tgt = target if target.dtype == jnp.bfloat16 else jnp.asarray(target, dt)
        tgt_f = tgt.reshape(n, c, s)
        dense_target = False
    else:                                            # dense class indices
        tgt_f = jnp.asarray(target, jnp.int32).reshape(n, s)
        dense_target = True

    chan, scal = _dice_channel_sums(logits_f, tgt_f, w_mid,
                                    apply_softmax=apply_softmax,
                                    dense_target=dense_target, ts=ts)
    pt_ = chan[0, :, 0]       # sum p*t*ig
    p_ = chan[1, :, 0]        # sum p*ig
    t_ = chan[2, :, 0]        # sum t*ig
    ptm_ = chan[3, :, 0]      # sum p*t*ig*pm
    pm_p = chan[4, :, 0]      # sum p*ig*pm
    pm_t = chan[5, :, 0]      # sum t*ig*pm
    ig_sum = scal[0, 0]       # sum_s ig
    igpm_sum = scal[1, 0]     # sum_s ig*pm
    pm_sum = scal[2, 0]       # sum_s pm

    nf = float(n)
    s1 = pt_
    s2 = p_ + t_
    s3 = nf * ig_sum - p_ - t_ + pt_          # sum (1-p)(1-t)*ig
    s4 = 2.0 * nf * ig_sum - p_ - t_          # sum ((1-p)+(1-t))*ig
    s5 = nf * igpm_sum - pm_p - pm_t + ptm_   # sum (1-p)(1-t)*ig*pm
    s6 = 2.0 * nf * igpm_sum - pm_p - pm_t    # sum ((1-p)+(1-t))*ig*pm
    t_sum = t_                                # sum onehot*ig   -> target_empty
    bt_sum = nf * ig_sum - t_                 # sum (1-onehot)*ig -> bg_target_empty

    gw = (class_weight > 0).astype(dt)
    w = weight * gw
    needs_ptm = (jnp.sum(w) == 0).astype(dt)

    numerator = 2.0 * class_weight * (w * s1)
    denominator = class_weight * (w * s2)
    numerator2 = 2.0 * (w * s3 + needs_ptm * gw * s5)
    denominator2 = w * s4 + needs_ptm * gw * s6

    target_empty = (t_sum == 0).astype(dt)
    bg_target_empty = (bt_sum == 0).astype(dt)
    bg_mask_sum = nf * s * w + needs_ptm * gw * (nf * pm_sum)
    bg_mask_empty = (bg_mask_sum == 0).astype(dt)

    no_tp = (numerator == 0).astype(dt)
    numerator = numerator + (1.0 - w)
    denominator = denominator + (1.0 - w)
    numerator2 = numerator2 * (1.0 - bg_mask_empty) + bg_mask_empty
    denominator2 = denominator2 * (1.0 - bg_mask_empty) + bg_mask_empty
    numerator = numerator * (1.0 - target_empty) + target_empty
    denominator = denominator * (1.0 - target_empty) + target_empty
    numerator2 = numerator2 * (1.0 - bg_target_empty) + bg_target_empty
    denominator2 = denominator2 * (1.0 - bg_target_empty) + bg_target_empty

    loss_per_channel = (1.0 + no_tp
                        - (numerator / denominator
                           + no_tp * numerator2 / denominator2))
    dice = (jnp.sum(loss_per_channel[1:-1])
            / jnp.sum((class_weight[1:-1] > 0).astype(dt)))
    # early-return branch of dice_loss (weight.sum() == 0 -> dice == 0)
    dice = jnp.where(jnp.sum(weight) == 0, jnp.zeros((), dt), dice)
    # TODO(synk): debug-only print/IPython.embed() branches (denominator == 0 /
    # NaN checks) of the reference have no kernel equivalent and are omitted.
    return -jnp.log(1.0 - dice + 1e-10)


class NLDSCLossPallas:
    """Pallas port of elektronn3 NLDSCLoss (apply_softmax + nldsc_loss)."""

    def __init__(self, apply_softmax=True, weight=1.0, class_weight=1.0):
        self.apply_softmax = apply_softmax
        self.weight = jnp.asarray(weight, jnp.float32)
        self.class_weight = jnp.asarray(class_weight, jnp.float32)

    def __call__(self, output, target):
        return nldsc_loss_pallas(output, target, self.weight, self.class_weight,
                                 apply_softmax=self.apply_softmax)


# ----------------------------------------------------------------------------
# Pure-JAX reference (line-by-line port of the PyTorch code) for verification.
# ----------------------------------------------------------------------------
def _channelwise_sum_ref(x):
    return jnp.sum(x, axis=tuple([0] + list(range(2, x.ndim))))


def nldsc_loss_ref(output, target, weight, class_weight):
    probs = jax.nn.softmax(jnp.asarray(output, jnp.float32), axis=1)
    dt = probs.dtype
    c = probs.shape[1]
    if target.shape == probs.shape:
        onehot = target.astype(dt)
    else:
        onehot = jax.nn.one_hot(target, c, axis=1, dtype=dt)
    weight = jnp.broadcast_to(jnp.asarray(weight, dt), (c,))
    class_weight = jnp.broadcast_to(jnp.asarray(class_weight, dt), (c,))
    ignore_mask = (1 - onehot[0][-1]).reshape(1, 1, *probs.shape[2:])
    bg_probs = 1 - probs
    bg_target = 1 - onehot
    global_weight = (class_weight > 0).astype(dt)
    positive_target_mask = ((weight.reshape(1, -1, 1, 1, 1) * onehot)[0][1:-1]
                            .sum(axis=0).reshape(1, 1, *probs.shape[2:]))
    weight = weight * global_weight
    dense_weight = weight.reshape(1, -1, 1, 1, 1)
    target_empty = ((onehot * ignore_mask).sum(axis=(0, 2, 3, 4)) == 0).astype(dt)
    bg_target_empty = ((bg_target * ignore_mask).sum(axis=(0, 2, 3, 4)) == 0).astype(dt)
    needs_ptm = (dense_weight.sum() == 0).astype(dt)
    bg_mask = (jnp.ones_like(bg_probs) * dense_weight
               + needs_ptm * positive_target_mask * global_weight.reshape(1, -1, 1, 1, 1))
    intersection = probs * onehot * ignore_mask * dense_weight
    intersection2 = bg_probs * bg_target * ignore_mask * bg_mask
    denominator = (probs + onehot) * ignore_mask * dense_weight
    denominator2 = (bg_probs + bg_target) * ignore_mask * bg_mask
    numerator = 2 * class_weight * _channelwise_sum_ref(intersection)
    numerator2 = 2 * _channelwise_sum_ref(intersection2)
    denominator = class_weight * _channelwise_sum_ref(denominator)
    denominator2 = _channelwise_sum_ref(denominator2)
    no_tp = (numerator == 0).astype(dt)
    numerator = numerator + 1 - weight
    denominator = denominator + 1 - weight
    bg_mask_empty = (bg_mask.sum(axis=(0, 2, 3, 4)) == 0).astype(dt)
    numerator2 = numerator2 * (1 - bg_mask_empty) + bg_mask_empty
    denominator2 = denominator2 * (1 - bg_mask_empty) + bg_mask_empty
    numerator = numerator * (1 - target_empty) + target_empty
    denominator = denominator * (1 - target_empty) + target_empty
    numerator2 = numerator2 * (1 - bg_target_empty) + bg_target_empty
    denominator2 = denominator2 * (1 - bg_target_empty) + bg_target_empty
    loss_per_channel = (1 + no_tp
                        - (numerator / denominator + no_tp * numerator2 / denominator2))
    dice = (jnp.sum(loss_per_channel[1:-1])
            / jnp.sum((class_weight[1:-1] > 0).astype(dt)))
    return -jnp.log(1 - dice + 1e-10)


if __name__ == "__main__":
    key = jax.random.PRNGKey(0)
    k1, k2, k3, k4 = jax.random.split(key, 4)

    # Case 1: dense integer targets (channel 0 = background, channel C-1 = ignore).
    N, C, D, H, W = 2, 5, 4, 8, 8
    output = jax.random.normal(k1, (N, C, D, H, W), dtype=jnp.float32)
    target = jax.random.randint(k2, (N, D, H, W), 0, C, dtype=jnp.int32)
    weight = jnp.array([0.5, 1.0, 1.0, 1.0, 0.0], dtype=jnp.float32)
    class_weight = jnp.ones((C,), dtype=jnp.float32)

    loss_mod = NLDSCLossPallas(apply_softmax=True, weight=weight,
                               class_weight=class_weight)
    loss = jax.block_until_ready(loss_mod(output, target))
    ref = jax.block_until_ready(nldsc_loss_ref(output, target, weight, class_weight))
    np.testing.assert_allclose(np.asarray(loss), np.asarray(ref),
                               rtol=5e-4, atol=1e-5)

    # Case 2: already-one-hot target path (target.shape == output.shape).
    onehot_target = jax.nn.one_hot(target, C, axis=1, dtype=jnp.float32)
    loss_oh = jax.block_until_ready(loss_mod(output, onehot_target))
    np.testing.assert_allclose(np.asarray(loss_oh), np.asarray(ref),
                               rtol=5e-4, atol=1e-5)

    # Case 3: multi-tile grid, one tile per TensorCore lane-split, partial tail.
    D2, H2, W2 = 4, 6, 10            # S = 240; ts=128 -> 2 tiles, 112-lane tail
    output2 = jax.random.normal(k3, (N, C, D2, H2, W2), dtype=jnp.float32)
    target2 = jax.random.randint(k4, (N, D2, H2, W2), 0, C, dtype=jnp.int32)
    loss2 = jax.block_until_ready(
        nldsc_loss_pallas(output2, target2, weight, class_weight,
                          apply_softmax=True, ts=128))
    ref2 = jax.block_until_ready(nldsc_loss_ref(output2, target2, weight, class_weight))
    np.testing.assert_allclose(np.asarray(loss2), np.asarray(ref2),
                               rtol=5e-4, atol=1e-5)

    # Case 4: one-hot target with a partial tail tile (tail sanitization path).
    onehot_target2 = jax.nn.one_hot(target2, C, axis=1, dtype=jnp.float32)
    loss2_oh = jax.block_until_ready(
        nldsc_loss_pallas(output2, onehot_target2, weight, class_weight,
                          apply_softmax=True, ts=128))
    np.testing.assert_allclose(np.asarray(loss2_oh), np.asarray(ref2),
                               rtol=5e-4, atol=1e-5)

    print("KERNEL_OK")
</pallas_src>

<mosaic_0001>
module attributes {stable_mosaic.version = 11 : i64} {
  func.func @_dice_sums_kernel(%arg0: i32, %arg1: i32, %arg2: memref<2x5x256xf32, #tpu.memory_space<vmem>>, %arg3: memref<2x256xi32, #tpu.memory_space<vmem>>, %arg4: memref<5x1xf32, #tpu.memory_space<vmem>>, %arg5: memref<1x6x5x1xf32, #tpu.memory_space<vmem>>, %arg6: memref<1x3x1xf32, #tpu.memory_space<vmem>>, %arg7: memref<6x5x256xf32, #tpu.memory_space<vmem>>, %arg8: memref<3x256xf32, #tpu.memory_space<vmem>>) attributes {dimension_semantics = [#tpu.dimension_semantics<parallel>, #tpu.dimension_semantics<arbitrary>], iteration_bounds = array<i64: 2, 1>, scalar_prefetch = 0 : i64, scratch_operands = 2 : i64, tpu.core_type = #tpu.core_type<tc>, window_params = [{transform_indices = @transform_0, window_bounds = array<i64: 2, 5, 256>}, {transform_indices = @transform_1, window_bounds = array<i64: 2, 256>}, {pipeline_mode = #tpu.pipeline_mode<synchronous>, transform_indices = @transform_2, window_bounds = array<i64: 5, 1>}, {transform_indices = @transform_3, window_bounds = array<i64: 1, 6, 5, 1>}, {transform_indices = @transform_4, window_bounds = array<i64: 1, 3, 1>}]} {
    %c1_i32 = arith.constant 1 : i32
    %0 = arith.muli %arg0, %c1_i32 : i32
    %1 = arith.addi %0, %arg1 : i32
    %c0_i32 = arith.constant 0 : i32
    %2 = arith.cmpi eq, %arg1, %c0_i32 : i32
    %3 = arith.extui %2 : i1 to i32
    %c0_i32_0 = arith.constant 0 : i32
    %4 = arith.cmpi ne, %3, %c0_i32_0 : i32
    scf.if %4 {
      %cst = arith.constant 0.000000e+00 : f32
      %11 = vector.broadcast %cst : f32 to vector<6x5x256xf32>
      %c0 = arith.constant 0 : index
      %c0_5 = arith.constant 0 : index
      %c0_6 = arith.constant 0 : index
      %12 = vector.load %arg7[%c0, %c0_5, %c0_6] : memref<6x5x256xf32, #tpu.memory_space<vmem>>, vector<6x5x256xf32>
      tpu.vector_store %arg7[%c0, %c0_5, %c0_6], %11 {strides = array<i32>} : memref<6x5x256xf32, #tpu.memory_space<vmem>>, vector<6x5x256xf32>,
      %cst_7 = arith.constant 0.000000e+00 : f32
      %13 = vector.broadcast %cst_7 : f32 to vector<3x256xf32>
      %c0_8 = arith.constant 0 : index
      %c0_9 = arith.constant 0 : index
      %14 = vector.load %arg8[%c0_8, %c0_9] : memref<3x256xf32, #tpu.memory_space<vmem>>, vector<3x256xf32>
      tpu.vector_store %arg8[%c0_8, %c0_9], %13 {strides = array<i32>} : memref<3x256xf32, #tpu.memory_space<vmem>>, vector<3x256xf32>,
    } else {
    }
    %c1_i32_1 = arith.constant 1 : i32
    %5 = arith.cmpi slt, %1, %c1_i32_1 : i32
    %6 = arith.extui %5 : i1 to i32
    %c0_i32_2 = arith.constant 0 : i32
    %7 = arith.cmpi ne, %6, %c0_i32_2 : i32
    scf.if %7 {
      %c0 = arith.constant 0 : index
      %c0_5 = arith.constant 0 : index
      %c0_6 = arith.constant 0 : index
      %11 = vector.load %arg2[%c0, %c0_5, %c0_6] : memref<2x5x256xf32, #tpu.memory_space<vmem>>, vector<2x5x256xf32>
      %c0_7 = arith.constant 0 : index
      %c0_8 = arith.constant 0 : index
      %12 = vector.load %arg3[%c0_7, %c0_8] : memref<2x256xi32, #tpu.memory_space<vmem>>, vector<2x256xi32>
      %13 = tpu.iota {dimensions = array<i32: 1>} : vector<1x5x256xi32>
      %14 = vector.shape_cast %12 : vector<2x256xi32> to vector<2x1x256xi32>
      %15 = vector.broadcast %14 : vector<2x1x256xi32> to vector<2x5x256xi32>
      %16 = vector.broadcast %13 : vector<1x5x256xi32> to vector<2x5x256xi32>
      %17 = arith.cmpi eq, %15, %16 : vector<2x5x256xi32>
      %18 = arith.extui %17 : vector<2x5x256xi1> to vector<2x5x256xi32>
      %19 = arith.sitofp %18 : vector<2x5x256xi32> to vector<2x5x256xf32>
      %20 = vector.extract_strided_slice %12 {offsets = [0, 0], sizes = [1, 256], strides = [1, 1]} : vector<2x256xi32> to vector<1x256xi32>
      %c4_i32 = arith.constant 4 : i32
      %21 = vector.broadcast %c4_i32 : i32 to vector<1x256xi32>
      %22 = arith.cmpi ne, %20, %21 : vector<1x256xi32>
      %23 = arith.extui %22 : vector<1x256xi1> to vector<1x256xi32>
      %24 = arith.sitofp %23 : vector<1x256xi32> to vector<1x256xf32>
      %c0_9 = arith.constant 0 : index
      %c0_10 = arith.constant 0 : index
      %25 = vector.load %arg4[%c0_9, %c0_10] : memref<5x1xf32, #tpu.memory_space<vmem>>, vector<5x1xf32>
      %26 = vector.extract_strided_slice %19 {offsets = [0, 0, 0], sizes = [1, 5, 256], strides = [1, 1, 1]} : vector<2x5x256xf32> to vector<1x5x256xf32>
      %27 = vector.shape_cast %26 : vector<1x5x256xf32> to vector<5x256xf32>
      %28 = vector.broadcast %25 : vector<5x1xf32> to vector<5x256xf32>
      %29 = arith.mulf %28, %27 : vector<5x256xf32>
      %cst = arith.constant dense<0.000000e+00> : vector<256xf32>
      %30 = vector.multi_reduction <add>, %29, %cst [0] : vector<5x256xf32> to vector<256xf32>
      %31 = vector.shape_cast %30 : vector<256xf32> to vector<1x256xf32>
      %cst_11 = arith.constant dense<0xFF800000> : vector<2x256xf32>
      %32 = vector.multi_reduction <maximumf>, %11, %cst_11 [1] : vector<2x5x256xf32> to vector<2x256xf32>
      %33 = vector.shape_cast %32 : vector<2x256xf32> to vector<2x1x256xf32>
      %34 = vector.broadcast %33 : vector<2x1x256xf32> to vector<2x5x256xf32>
      %35 = arith.subf %11, %34 : vector<2x5x256xf32>
      %36 = math.exp %35 : vector<2x5x256xf32>
      %cst_12 = arith.constant dense<0.000000e+00> : vector<2x256xf32>
      %37 = vector.multi_reduction <add>, %36, %cst_12 [1] : vector<2x5x256xf32> to vector<2x256xf32>
      %38 = vector.shape_cast %37 : vector<2x256xf32> to vector<2x1x256xf32>
      %39 = tpu.reciprocal %38 : vector<2x1x256xf32> -> vector<2x1x256xf32>
      %40 = vector.shape_cast %24 : vector<1x256xf32> to vector<1x1x256xf32>
      %41 = vector.broadcast %40 : vector<1x1x256xf32> to vector<2x1x256xf32>
      %42 = arith.mulf %39, %41 : vector<2x1x256xf32>
      %43 = vector.broadcast %42 : vector<2x1x256xf32> to vector<2x5x256xf32>
      %44 = arith.mulf %36, %43 : vector<2x5x256xf32>
      %45 = arith.mulf %44, %19 : vector<2x5x256xf32>
      %cst_13 = arith.constant dense<0.000000e+00> : vector<5x256xf32>
      %46 = vector.multi_reduction <add>, %44, %cst_13 [0] : vector<2x5x256xf32> to vector<5x256xf32>
      %cst_14 = arith.constant dense<0.000000e+00> : vector<5x256xf32>
      %47 = vector.multi_reduction <add>, %45, %cst_14 [0] : vector<2x5x256xf32> to vector<5x256xf32>
      %cst_15 = arith.constant dense<0.000000e+00> : vector<5x256xf32>
      %48 = vector.multi_reduction <add>, %19, %cst_15 [0] : vector<2x5x256xf32> to vector<5x256xf32>
      %49 = vector.broadcast %24 : vector<1x256xf32> to vector<5x256xf32>
      %50 = arith.mulf %48, %49 : vector<5x256xf32>
      %c0_16 = arith.constant 0 : index
      %c0_17 = arith.constant 0 : index
      %c0_18 = arith.constant 0 : index
      %51 = vector.load %arg7[%c0_16, %c0_17, %c0_18] : memref<6x5x256xf32, #tpu.memory_space<vmem>>, vector<1x5x256xf32>
      %52 = vector.shape_cast %51 : vector<1x5x256xf32> to vector<5x256xf32>
      %53 = arith.addf %52, %47 : vector<5x256xf32>
      %c0_19 = arith.constant 0 : index
      %c0_20 = arith.constant 0 : index
      %c0_21 = arith.constant 0 : index
      %54 = vector.load %arg7[%c0_19, %c0_20, %c0_21] : memref<6x5x256xf32, #tpu.memory_space<vmem>>, vector<1x5x256xf32>
      %55 = vector.shape_cast %54 : vector<1x5x256xf32> to vector<5x256xf32>
      %56 = vector.shape_cast %53 : vector<5x256xf32> to vector<1x5x256xf32>
      tpu.vector_store %arg7[%c0_19, %c0_20, %c0_21], %56 {strides = array<i32>} : memref<6x5x256xf32, #tpu.memory_space<vmem>>, vector<1x5x256xf32>,
      %c1 = arith.constant 1 : index
      %c0_22 = arith.constant 0 : index
      %c0_23 = arith.constant 0 : index
      %57 = vector.load %arg7[%c1, %c0_22, %c0_23] : memref<6x5x256xf32, #tpu.memory_space<vmem>>, vector<1x5x256xf32>
      %58 = vector.shape_cast %57 : vector<1x5x256xf32> to vector<5x256xf32>
      %59 = arith.addf %58, %46 : vector<5x256xf32>
      %c1_24 = arith.constant 1 : index
      %c0_25 = arith.constant 0 : index
      %c0_26 = arith.constant 0 : index
      %60 = vector.load %arg7[%c1_24, %c0_25, %c0_26] : memref<6x5x256xf32, #tpu.memory_space<vmem>>, vector<1x5x256xf32>
      %61 = vector.shape_cast %60 : vector<1x5x256xf32> to vector<5x256xf32>
      %62 = vector.shape_cast %59 : vector<5x256xf32> to vector<1x5x256xf32>
      tpu.vector_store %arg7[%c1_24, %c0_25, %c0_26], %62 {strides = array<i32>} : memref<6x5x256xf32, #tpu.memory_space<vmem>>, vector<1x5x256xf32>,
      %c2 = arith.constant 2 : index
      %c0_27 = arith.constant 0 : index
      %c0_28 = arith.constant 0 : index
      %63 = vector.load %arg7[%c2, %c0_27, %c0_28] : memref<6x5x256xf32, #tpu.memory_space<vmem>>, vector<1x5x256xf32>
      %64 = vector.shape_cast %63 : vector<1x5x256xf32> to vector<5x256xf32>
      %65 = arith.addf %64, %50 : vector<5x256xf32>
      %c2_29 = arith.constant 2 : index
      %c0_30 = arith.constant 0 : index
      %c0_31 = arith.constant 0 : index
      %66 = vector.load %arg7[%c2_29, %c0_30, %c0_31] : memref<6x5x256xf32, #tpu.memory_space<vmem>>, vector<1x5x256xf32>
      %67 = vector.shape_cast %66 : vector<1x5x256xf32> to vector<5x256xf32>
      %68 = vector.shape_cast %65 : vector<5x256xf32> to vector<1x5x256xf32>
      tpu.vector_store %arg7[%c2_29, %c0_30, %c0_31], %68 {strides = array<i32>} : memref<6x5x256xf32, #tpu.memory_space<vmem>>, vector<1x5x256xf32>,
      %c3 = arith.constant 3 : index
      %c0_32 = arith.constant 0 : index
      %c0_33 = arith.constant 0 : index
      %69 = vector.load %arg7[%c3, %c0_32, %c0_33] : memref<6x5x256xf32, #tpu.memory_space<vmem>>, vector<1x5x256xf32>
      %70 = vector.shape_cast %69 : vector<1x5x256xf32> to vector<5x256xf32>
      %71 = vector.broadcast %31 : vector<1x256xf32> to vector<5x256xf32>
      %72 = arith.mulf %47, %71 : vector<5x256xf32>
      %73 = arith.addf %70, %72 : vector<5x256xf32>
      %c3_34 = arith.constant 3 : index
      %c0_35 = arith.constant 0 : index
      %c0_36 = arith.constant 0 : index
      %74 = vector.load %arg7[%c3_34, %c0_35, %c0_36] : memref<6x5x256xf32, #tpu.memory_space<vmem>>, vector<1x5x256xf32>
      %75 = vector.shape_cast %74 : vector<1x5x256xf32> to vector<5x256xf32>
      %76 = vector.shape_cast %73 : vector<5x256xf32> to vector<1x5x256xf32>
      tpu.vector_store %arg7[%c3_34, %c0_35, %c0_36], %76 {strides = array<i32>} : memref<6x5x256xf32, #tpu.memory_space<vmem>>, vector<1x5x256xf32>,
      %c4 = arith.constant 4 : index
      %c0_37 = arith.constant 0 : index
      %c0_38 = arith.constant 0 : index
      %77 = vector.load %arg7[%c4, %c0_37, %c0_38] : memref<6x5x256xf32, #tpu.memory_space<vmem>>, vector<1x5x256xf32>
      %78 = vector.shape_cast %77 : vector<1x5x256xf32> to vector<5x256xf32>
      %79 = vector.broadcast %31 : vector<1x256xf32> to vector<5x256xf32>
      %80 = arith.mulf %46, %79 : vector<5x256xf32>
      %81 = arith.addf %78, %80 : vector<5x256xf32>
      %c4_39 = arith.constant 4 : index
      %c0_40 = arith.constant 0 : index
      %c0_41 = arith.constant 0 : index
      %82 = vector.load %arg7[%c4_39, %c0_40, %c0_41] : memref<6x5x256xf32, #tpu.memory_space<vmem>>, vector<1x5x256xf32>
      %83 = vector.shape_cast %82 : vector<1x5x256xf32> to vector<5x256xf32>
      %84 = vector.shape_cast %81 : vector<5x256xf32> to vector<1x5x256xf32>
      tpu.vector_store %arg7[%c4_39, %c0_40, %c0_41], %84 {strides = array<i32>} : memref<6x5x256xf32, #tpu.memory_space<vmem>>, vector<1x5x256xf32>,
      %c5 = arith.constant 5 : index
      %c0_42 = arith.constant 0 : index
      %c0_43 = arith.constant 0 : index
      %85 = vector.load %arg7[%c5, %c0_42, %c0_43] : memref<6x5x256xf32, #tpu.memory_space<vmem>>, vector<1x5x256xf32>
      %86 = vector.shape_cast %85 : vector<1x5x256xf32> to vector<5x256xf32>
      %87 = vector.broadcast %31 : vector<1x256xf32> to vector<5x256xf32>
      %88 = arith.mulf %50, %87 : vector<5x256xf32>
      %89 = arith.addf %86, %88 : vector<5x256xf32>
      %c5_44 = arith.constant 5 : index
      %c0_45 = arith.constant 0 : index
      %c0_46 = arith.constant 0 : index
      %90 = vector.load %arg7[%c5_44, %c0_45, %c0_46] : memref<6x5x256xf32, #tpu.memory_space<vmem>>, vector<1x5x256xf32>
      %91 = vector.shape_cast %90 : vector<1x5x256xf32> to vector<5x256xf32>
      %92 = vector.shape_cast %89 : vector<5x256xf32> to vector<1x5x256xf32>
      tpu.vector_store %arg7[%c5_44, %c0_45, %c0_46], %92 {strides = array<i32>} : memref<6x5x256xf32, #tpu.memory_space<vmem>>, vector<1x5x256xf32>,
      %c0_47 = arith.constant 0 : index
      %c0_48 = arith.constant 0 : index
      %93 = vector.load %arg8[%c0_47, %c0_48] : memref<3x256xf32, #tpu.memory_space<vmem>>, vector<1x256xf32>
      %94 = arith.addf %93, %24 : vector<1x256xf32>
      %c0_49 = arith.constant 0 : index
      %c0_50 = arith.constant 0 : index
      %95 = vector.load %arg8[%c0_49, %c0_50] : memref<3x256xf32, #tpu.memory_space<vmem>>, vector<1x256xf32>
      tpu.vector_store %arg8[%c0_49, %c0_50], %94 {strides = array<i32>} : memref<3x256xf32, #tpu.memory_space<vmem>>, vector<1x256xf32>,
      %c1_51 = arith.constant 1 : index
      %c0_52 = arith.constant 0 : index
      %96 = vector.load %arg8[%c1_51, %c0_52] : memref<3x256xf32, #tpu.memory_space<vmem>>, vector<1x256xf32>
      %97 = arith.mulf %24, %31 : vector<1x256xf32>
      %98 = arith.addf %96, %97 : vector<1x256xf32>
      %c1_53 = arith.constant 1 : index
      %c0_54 = arith.constant 0 : index
      %99 = vector.load %arg8[%c1_53, %c0_54] : memref<3x256xf32, #tpu.memory_space<vmem>>, vector<1x256xf32>
      tpu.vector_store %arg8[%c1_53, %c0_54], %98 {strides = array<i32>} : memref<3x256xf32, #tpu.memory_space<vmem>>, vector<1x256xf32>,
      %c2_55 = arith.constant 2 : index
      %c0_56 = arith.constant 0 : index
      %100 = vector.load %arg8[%c2_55, %c0_56] : memref<3x256xf32, #tpu.memory_space<vmem>>, vector<1x256xf32>
      %101 = arith.addf %100, %31 : vector<1x256xf32>
      %c2_57 = arith.constant 2 : index
      %c0_58 = arith.constant 0 : index
      %102 = vector.load %arg8[%c2_57, %c0_58] : memref<3x256xf32, #tpu.memory_space<vmem>>, vector<1x256xf32>
      tpu.vector_store %arg8[%c2_57, %c0_58], %101 {strides = array<i32>} : memref<3x256xf32, #tpu.memory_space<vmem>>, vector<1x256xf32>,
    } else {
    }
    %c0_i32_3 = arith.constant 0 : i32
    %8 = arith.cmpi eq, %arg1, %c0_i32_3 : i32
    %9 = arith.extui %8 : i1 to i32
    %c0_i32_4 = arith.constant 0 : i32
    %10 = arith.cmpi ne, %9, %c0_i32_4 : i32
    scf.if %10 {
      %c0 = arith.constant 0 : index
      %c0_5 = arith.constant 0 : index
      %c0_6 = arith.constant 0 : index
      %11 = vector.load %arg7[%c0, %c0_5, %c0_6] : memref<6x5x256xf32, #tpu.memory_space<vmem>>, vector<6x5x256xf32>
      %cst = arith.constant dense<0.000000e+00> : vector<6x5xf32>
      %12 = vector.multi_reduction <add>, %11, %cst [2] : vector<6x5x256xf32> to vector<6x5xf32>
      %13 = vector.shape_cast %12 : vector<6x5xf32> to vector<6x5x1xf32>
      %14 = vector.shape_cast %13 : vector<6x5x1xf32> to vector<1x6x5x1xf32>
      %c0_7 = arith.constant 0 : index
      %c0_8 = arith.constant 0 : index
      %c0_9 = arith.constant 0 : index
      %c0_10 = arith.constant 0 : index
      %15 = vector.load %arg5[%c0_7, %c0_8, %c0_9, %c0_10] : memref<1x6x5x1xf32, #tpu.memory_space<vmem>>, vector<1x6x5x1xf32>
      tpu.vector_store %arg5[%c0_7, %c0_8, %c0_9, %c0_10], %14 {strides = array<i32>} : memref<1x6x5x1xf32, #tpu.memory_space<vmem>>, vector<1x6x5x1xf32>,
      %c0_11 = arith.constant 0 : index
      %c0_12 = arith.constant 0 : index
      %16 = vector.load %arg8[%c0_11, %c0_12] : memref<3x256xf32, #tpu.memory_space<vmem>>, vector<3x256xf32>
      %cst_13 = arith.constant dense<0.000000e+00> : vector<3xf32>
      %17 = vector.multi_reduction <add>, %16, %cst_13 [1] : vector<3x256xf32> to vector<3xf32>
      %18 = vector.shape_cast %17 : vector<3xf32> to vector<3x1xf32>
      %19 = vector.shape_cast %18 : vector<3x1xf32> to vector<1x3x1xf32>
      %c0_14 = arith.constant 0 : index
      %c0_15 = arith.constant 0 : index
      %c0_16 = arith.constant 0 : index
      %20 = vector.load %arg6[%c0_14, %c0_15, %c0_16] : memref<1x3x1xf32, #tpu.memory_space<vmem>>, vector<1x3x1xf32>
      tpu.vector_store %arg6[%c0_14, %c0_15, %c0_16], %19 {strides = array<i32>} : memref<1x3x1xf32, #tpu.memory_space<vmem>>, vector<1x3x1xf32>,
    } else {
    }
    return
  }
  func.func @transform_0(%arg0: i32, %arg1: i32) -> (i32, i32, i32) {
    %c1_i32 = arith.constant 1 : i32
    %0 = arith.muli %arg0, %c1_i32 : i32
    %1 = arith.addi %0, %arg1 : i32
    %c0_i32 = arith.constant 0 : i32
    %2 = arith.minsi %1, %c0_i32 : i32
    %c0_i32_0 = arith.constant 0 : i32
    %c0_i32_1 = arith.constant 0 : i32
    %c0_i32_2 = arith.constant 0 : i32
    return %c0_i32_0, %c0_i32_1, %2 : i32, i32, i32
  }
  func.func @transform_1(%arg0: i32, %arg1: i32) -> (i32, i32) {
    %c1_i32 = arith.constant 1 : i32
    %0 = arith.muli %arg0, %c1_i32 : i32
    %1 = arith.addi %0, %arg1 : i32
    %c0_i32 = arith.constant 0 : i32
    %2 = arith.minsi %1, %c0_i32 : i32
    %c0_i32_0 = arith.constant 0 : i32
    %c0_i32_1 = arith.constant 0 : i32
    return %c0_i32_0, %2 : i32, i32
  }
  func.func @transform_2(%arg0: i32, %arg1: i32) -> (i32, i32) {
    %c0_i32 = arith.constant 0 : i32
    %c0_i32_0 = arith.constant 0 : i32
    %c0_i32_1 = arith.constant 0 : i32
    return %c0_i32, %c0_i32_0 : i32, i32
  }
  func.func @transform_3(%arg0: i32, %arg1: i32) -> (i32, i32, i32, i32) {
    %c0_i32 = arith.constant 0 : i32
    %c0_i32_0 = arith.constant 0 : i32
    %c0_i32_1 = arith.constant 0 : i32
    %c0_i32_2 = arith.constant 0 : i32
    return %arg0, %c0_i32, %c0_i32_0, %c0_i32_1 : i32, i32, i32, i32
  }
  func.func @transform_4(%arg0: i32, %arg1: i32) -> (i32, i32, i32) {
    %c0_i32 = arith.constant 0 : i32
    %c0_i32_0 = arith.constant 0 : i32
    %c0_i32_1 = arith.constant 0 : i32
    return %arg0, %c0_i32, %c0_i32_0 : i32, i32, i32
  }
}

</mosaic_0001>

<bundles_post_ra>
// kernel: tpu_custom_call.1
= control target key start
LH: loop header
LB: loop body
LE: loop exit
PB: predicated region body
PF: predicated region fallthrough
CT: control target
= control target key end

     0   :  { %s915_s15 = smov 0   ;;  %s917_s16 = smov 0   ;;  %s1112_s0 = inlined_call_operand.vmem [shape: f32[2,5,256], index: 0, kind: input, shape index: {}]   ;;  %s1113_s1 = inlined_call_operand.vmem [shape: s32[2,256], index: 1, kind: input, shape index: {}]   ;;  %s1114_s2 = inlined_call_operand.vmem [shape: f32[5,1], index: 2, kind: input, shape index: {}]   ;;  %s1115_s3 = inlined_call_operand.vmem [shape: f32[2,6,5,1], index: 3, kind: output, shape index: {0}]   ;;  %s1116_s4 = inlined_call_operand.vmem [shape: f32[2,3,1], index: 4, kind: output, shape index: {1}]  }
   0x1   :  { %s919_s17 = smov 0  }
   0x2 LB: > { %s27_s18 = sadd.s32 1, %s879_s16  ;;  %p798_p0 = scmp.ge.s32.totalorder %s883_s17, 1  ;;  %s883_s17 = sphi %s919_s17, %s15_s17   ;;  %s879_s16 = sphi %s917_s16, %s1120_s16   ;;  %s875_s15 = sphi %s915_s15, %s1119_s15  }
   0x3   : > { %p29_p1 = scmp.ge.s32.totalorder %s27_s18, 2  ;;  %p213_p2 = scmp.lt.s32.totalorder %s883_s17, 3 }
   0x5   : > { %s1122_s18 = smov (%p29_p1, %s27_s18), 0  ;;  %p214_p3 = pnand %p798_p0, %p213_p2 }
   0x6   : > { %p255_p4 = scmp.lt.s32.totalorder (!%p214_p3), %s875_s15, 0  ;;  %p278_p5 = scmp.lt.s32.totalorder (!%p214_p3), %s875_s15, 1 }
   0x7   : > { %217 = sbr.rel (%p214_p3) target bundleno = 329 (0x149), region = 32  ;;  %p805_p7 = scmp.ge.s32.totalorder (!%p214_p3), %s875_s15, 1 }
   0xc   : > { %v885_v0 = vmov 0.0   ;;  %s256_s19 = scalar_select %p255_p4, %s875_s15, 0 }
   0xd   : > { %292 = vst [vmem:[#allocation2 + $0x30] sm:$0x1f] %v885_v0  ;;  %293 = vst [vmem:[#allocation2] sm:$0x1f] %v885_v0  ;;  %s279_s20 = scalar_select %p278_p5, %s875_s15, 1 }
   0xe   : > { %294 = vst [vmem:[#allocation2 + $0x58] sm:$0x1f] %v885_v0  ;;  %295 = vst [vmem:[#allocation2 + $0x18] sm:$0x1f] %v885_v0  ;;  %s799_s21 = sshll.u32 %s256_s19, 1 }
   0xf   : > { %296 = vst [vmem:[#allocation2 + $0x50] sm:$0x1f] %v885_v0  ;;  %297 = vst [vmem:[#allocation2 + $0x20] sm:$0x1f] %v885_v0  ;;  %p258_p6 = scmp.lt.s32.totalorder %s799_s21, 1  ;;  %s813_s22 = smul.u32 48, %s279_s20 }
  0x10   : > { %298 = vst [vmem:[#allocation2 + $0x8] sm:$0x1f] %v885_v0  ;;  %299 = vst [vmem:[#allocation2 + $0x38] sm:$0x1f] %v885_v0  ;;  %s804_s23 = sshll.u32 %s279_s20, 2  ;;  %308 = sbr.rel (%p805_p7) target bundleno = 174 (0xae), region = 40 }
  0x11   : > { %300 = vst [vmem:[#allocation2 + $0x28] sm:$0x1f] %v885_v0  ;;  %301 = vst [vmem:[#allocation2 + $0x48] sm:$0x1f] %v885_v0  ;;  %s1124_s21 = smov (!%p258_p6, %s799_s21), 1  ;;  %s946_s26 = scalar_lea.vmem %s1115_s3, %s813_s22 }
  0x12   : > { %302 = vst [vmem:[#allocation2 + $0x10] sm:$0x1f] %v885_v0  ;;  %303 = vst [vmem:[#allocation2 + $0x40] sm:$0x1f] %v885_v0  ;;  %s951_s29 = scalar_lea.vmem %s1116_s4, %s804_s23  ;;  %s800_s30 = sshll.u32 %s1124_s21, 3 }
  0x13   : > { %304 = vst [vmem:[#allocation3] sm:$0x77] %v885_v0  ;;  %s802_s5 = sshll.u32 %s1124_s21, 1  ;;  %s261_s8 = scalar_lea.vmem %s1112_s0, %s800_s30 }
  0x14   : > { %s273_s11 = scalar_lea.vmem %s1113_s1, %s802_s5 }
  0x15   : > { %v355_v1 = vld [vmem:[%s1114_s2] sm:$0x1f]  ;;  %v314_v3 = vlaneseq  ;;  %v886_v4 = vmov 0   ;;  %v965_v5 = vld [vmem:[%s261_s8 + $0x8] sm:$0x1f]  ;;  %vm363_vm0 = vcmask 1044480  }
  0x16   : > { %v963_v2 = vld [vmem:[%s261_s8] sm:$0x1f]  ;;  %843 = vset.pattern.permute.xlu0 %v886_v4  ;;  %v967_v6 = vld [vmem:[%s261_s8 + $0x10] sm:$0x1f]  ;;  %v969_v7 = vld [vmem:[%s261_s8 + $0x18] sm:$0x1f] }
  0x17   : > { %358 = vperm.xlu0 %843, %v355_v1   ;;  %v313_v8 = vld [vmem:[%s273_s11] sm:$0xf]  ;;  %v972_v9 = vshrl.u32 %v314_v3, 7  ;;  %v887_v10 = vmov 1966171168   ;;  %v378_v12 = vsel %vm363_vm0, %v963_v2, -inf }
  0x18   : > { %v317_v11 = vunpack.c.l.s4 %v887_v10  ;;  %vm352_vm1 = vcmp.ne.s32.totalorder %v313_v8, 4  ;;  %v385_v13 = vsel %vm363_vm0, %v965_v5, -inf  ;;  %v888_v14 = vmov 0.0  }
  0x19   : > { %v978_v15 = vsel %vm352_vm1, 1.0, %v888_v14  ;;  %v379_v16 = vrot.slane %v378_v12, 4  ;;  %v386_v18 = vrot.slane %v385_v13, 4  ;;  %v392_v19 = vsel %vm363_vm0, %v967_v6, -inf }
  0x1a   : > { %v318_v17 = vunpack.c.0.s8 %v317_v11  ;;  %v399_v20 = vsel %vm363_vm0, %v969_v7, -inf  ;;  %v985_v21 = vsub.s32 0, %v972_v9  ;;  %v393_v23 = vrot.slane %v392_v19, 4  ;;  %v564_v10 = vld [vmem:[#allocation3] ss:$4 sm:$0x3] }
  0x1b   : > { %v380_v22 = vmax.f32 %v378_v12, %v379_v16  ;;  %v400_v24 = vrot.slane %v399_v20, 4  ;;  %v330_v26 = vsub.s32 1, %v972_v9  ;;  %v387_v27 = vmax.f32 %v385_v13, %v386_v18  ;;  %v531_v13 = vld [vmem:[#allocation2 + $0x50] sm:$0x1f] }
  0x1c   : > { %v988_v25 = vsub.s32 %v318_v17, %v972_v9  ;;  %v457_v28 = vsub.s32 2, %v972_v9  ;;  %v394_v30 = vmax.f32 %v392_v19, %v393_v23  ;;  %v994_v32 = vrot.slane %v978_v15, %v985_v21 }
  0x1d   : > { %v381_v29 = vrot.slane %v380_v22, 2  ;;  %v401_v31 = vmax.f32 %v399_v20, %v400_v24  ;;  %v388_v34 = vrot.slane %v387_v27, 2  ;;  %v532_v20 = vld [vmem:[#allocation2 + $0x20] sm:$0x1f]  ;;  %vm1038_vm6 = vcmp.lt.s32.totalorder %v314_v3, 256 }
  0x1e   : > { %v322_v33 = vrot.slane %v313_v8, %v988_v25  ;;  %v998_v35 = vrot.slane %v978_v15, %v457_v28  ;;  %v395_v37 = vrot.slane %v394_v30, 2  ;;  %v510_v39 = vrot.slane %v994_v32, %v985_v21 }
  0x1f   : > { %v382_v36 = vmax.f32 %v380_v22, %v381_v29  ;;  %v402_v38 = vrot.slane %v401_v31, 2  ;;  %v389_v43 = vmax.f32 %v387_v27, %v388_v34 }
  0x20   : > { %v323_v40 = vcombine.high %v322_v33, %v322_v33  ;;  %v327_v41 = vrot.slane %v322_v33, %v985_v21  ;;  %v331_v42 = vrot.slane %v322_v33, %v330_v26  ;;  %v396_v45 = vmax.f32 %v394_v30, %v395_v37 }
  0x21   : > { %v383_v44 = vrot.slane %v382_v36, 1  ;;  %v403_v46 = vmax.f32 %v401_v31, %v402_v38  ;;  %v514_v47 = vrot.slane %v998_v35, %v985_v21  ;;  %v390_v53 = vrot.slane %v389_v43, 1 }
  0x22   : > { %v335_v48 = vrot.slane %v323_v40, %v985_v21  ;;  %v339_v49 = vrot.slane %v323_v40, %v330_v26  ;;  %vm340_vm2 = vcmp.eq.s32.totalorder %v327_v41, %v972_v9  ;;  %vm341_vm3 = vcmp.eq.s32.totalorder %v331_v42, %v972_v9 }
  0x23   : > { %v1008_v50 = vsel %vm340_vm2, 1.0, %v888_v14  ;;  %v1010_v51 = vsel %vm341_vm3, 1.0, %v888_v14  ;;  %v384_v52 = vmax.f32 %v382_v36, %v383_v44  ;;  %v397_v54 = vrot.slane %v396_v45, 1 }
  0x24   : > { %vm342_vm4 = vcmp.eq.s32.totalorder %v335_v48, %v972_v9  ;;  %vm343_vm5 = vcmp.eq.s32.totalorder %v339_v49, %v972_v9  ;;  %v404_v55 = vrot.slane %v403_v46, 1  ;;  %v391_v58 = vmax.f32 %v389_v43, %v390_v53 }
  0x25   : > { %v1014_v56 = vsel %vm342_vm4, 1.0, %v888_v14  ;;  %v1016_v57 = vsel %vm343_vm5, 1.0, %v888_v14  ;;  %v406_v59 = vsub.f32 %v963_v2, %v384_v52  ;;  %v398_v60 = vmax.f32 %v396_v45, %v397_v54 }
  0x26   : > { %v405_v61 = vmax.f32 %v403_v46, %v404_v55  ;;  %v501_v62 = vsel %vm363_vm0, %v1008_v50, 0.0  ;;  %v502_v63 = vsel %vm363_vm0, %v1014_v56, 0.0  ;;  %v407_v0 = vsub.f32 %v965_v5, %v391_v58 }
  0x27   : > { %v410_v1 = vmul.f32 1.442695, %v406_v59  ;;  %v503_v4 = vadd.f32 %v502_v63, %v501_v62  ;;  %v504_v8 = vsel %vm363_vm0, %v1010_v51, 0.0  ;;  %v408_v11 = vsub.f32 %v967_v6, %v398_v60 }
  0x28   : > { %v409_v2 = vsub.f32 %v969_v7, %v405_v61  ;;  %v505_v12 = vsel %vm363_vm0, %v1016_v57, 0.0  ;;  %v571_v14 = vrot.slane %v978_v15, %v988_v25  ;;  %v412_v16 = vmul.f32 1.442695, %v407_v0 }
  0x29   : > { %844 = vpow2.f32 %v410_v1  ;;  %v506_v5 = vadd.f32 %v505_v12, %v504_v8  ;;  %v1032_v17 = vmul.f32 %v510_v39, %v503_v4  ;;  %v414_v18 = vmul.f32 1.442695, %v408_v11 }
  0x2a   : > { %v416_v19 = vmul.f32 1.442695, %v409_v2  ;;  %v573_v22 = vadd.f32 %v571_v14, %v564_v10  ;;  %846 = vpow2.f32 %v412_v16 }
  0x2b   : > { %v1034_v6 = vmul.f32 %v514_v47, %v506_v5  ;;  %v533_v7 = vadd.f32 %v531_v13, %v1032_v17  ;;  %848 = vpow2.f32 %v414_v18 }
  0x2c   : > { %578 = vst.msk [vmem:[#allocation3] ss:$4 sm:$0x3] %vm1038_vm6, %v573_v22  ;;  %850 = vpow2.f32 %v416_v19 }
  0x2d   : > { %v534_v24 = vadd.f32 %v532_v20, %v1034_v6  ;;  %535 = vst [vmem:[#allocation2 + $0x50] sm:$0x1f] %v533_v7 }
  0x2f   : > { %536 = vst [vmem:[#allocation2 + $0x20] sm:$0x1f] %v534_v24 }
  0x36   : > { %v845_v26 = vpop.eup %844 }
  0x37   : > { %v418_v27 = vsel %vm363_vm0, %v845_v26, 0.0  ;;  %v847_v28 = vpop.eup %846 }
  0x38   : > { %v419_v29 = vrot.slane %v418_v27, 4  ;;  %v849_v30 = vpop.eup %848  ;;  %v425_v3 = vsel %vm363_vm0, %v847_v28, 0.0 }
  0x39   : > { %v851_v31 = vpop.eup %850  ;;  %v426_v34 = vrot.slane %v425_v3, 4  ;;  %v432_v36 = vsel %vm363_vm0, %v849_v30, 0.0 }
  0x3a   : > { %v420_v33 = vadd.f32 %v419_v29, %v418_v27  ;;  %v433_v37 = vrot.slane %v432_v36, 4  ;;  %v439_v38 = vsel %vm363_vm0, %v851_v31, 0.0  ;;  %v524_v29 = vld [vmem:[#allocation2 + $0x58] sm:$0x1f] }
  0x3b   : > { %v427_v40 = vadd.f32 %v426_v34, %v425_v3  ;;  %v440_v41 = vrot.slane %v439_v38, 4 }
  0x3c   : > { %v421_v39 = vrot.slane %v420_v33, 2  ;;  %v434_v42 = vadd.f32 %v433_v37, %v432_v36  ;;  %v517_v36 = vld [vmem:[#allocation2 + $0x30] sm:$0x1f] }
  0x3d   : > { %v428_v44 = vrot.slane %v427_v40, 2  ;;  %v441_v45 = vadd.f32 %v440_v41, %v439_v38  ;;  %v518_v38 = vld [vmem:[#allocation2] sm:$0x1f] }
  0x3e   : > { %v422_v43 = vadd.f32 %v421_v39, %v420_v33  ;;  %v435_v46 = vrot.slane %v434_v42, 2  ;;  %v525_v33 = vld [vmem:[#allocation2 + $0x18] sm:$0x1f] }
  0x3f   : > { %v429_v48 = vadd.f32 %v428_v44, %v427_v40  ;;  %v442_v49 = vrot.slane %v441_v45, 2 }
  0x40   : > { %v423_v47 = vrot.slane %v422_v43, 1  ;;  %v436_v52 = vadd.f32 %v435_v46, %v434_v42 }
  0x41   : > { %v430_v54 = vrot.slane %v429_v48, 1  ;;  %v443_v55 = vadd.f32 %v442_v49, %v441_v45 }
  0x42   : > { %v424_v53 = vadd.f32 %v423_v47, %v422_v43  ;;  %v437_v58 = vrot.slane %v436_v52, 1 }
  0x43   : > { %v431_v59 = vadd.f32 %v430_v54, %v429_v48  ;;  %v444_v60 = vrot.slane %v443_v55, 1  ;;  %v889_v54 = vmov 1983009808  }
  0x44   : > { %852 = vrcp.f32 %v424_v53  ;;  %v438_v61 = vadd.f32 %v437_v58, %v436_v52 }
  0x45   : > { %v445_v62 = vadd.f32 %v444_v60, %v443_v55  ;;  %854 = vrcp.f32 %v431_v59  ;;  %v585_v55 = vunpack.c.l.s4 %v889_v54 }
  0x46   : > { %856 = vrcp.f32 %v438_v61 }
  0x47   : > { %858 = vrcp.f32 %v445_v62  ;;  %v586_v62 = vunpack.c.0.s8 %v585_v55 }
  0x51   : > { %v853_v63 = vpop.eup %852 }
  0x52   : > { %v461_v0 = vmul.f32 %v853_v63, %v994_v32  ;;  %v855_v1 = vpop.eup %854 }
  0x53   : > { %v857_v4 = vpop.eup %856  ;;  %v462_v8 = vmul.f32 %v855_v1, %v998_v35 }
  0x54   : > { %v468_v10 = vrot.slane %v461_v0, %v985_v21  ;;  %v859_v11 = vpop.eup %858  ;;  %v463_v2 = vmul.f32 %v857_v4, %v994_v32  ;;  %v539_v4 = vld [vmem:[#allocation2 + $0x38] sm:$0x1f] }
  0x55   : > { %v464_v12 = vmul.f32 %v859_v11, %v998_v35  ;;  %v472_v13 = vrot.slane %v462_v8, %v985_v21  ;;  %v547_v8 = vld [vmem:[#allocation2 + $0x28] sm:$0x1f]  ;;  %v589_v11 = vsub.s32 %v586_v62, %v972_v9 }
  0x56   : > { %v481_v14 = vmul.f32 %v845_v26, %v468_v10  ;;  %v476_v16 = vrot.slane %v463_v2, %v985_v21  ;;  %v548_v10 = vld [vmem:[#allocation2 + $0x48] sm:$0x1f] }
  0x57   : > { %v480_v5 = vrot.slane %v464_v12, %v985_v21  ;;  %v482_v18 = vmul.f32 %v847_v28, %v472_v13 }
  0x58   : > { %v485_v19 = vmul.f32 %v1008_v50, %v481_v14  ;;  %v483_v20 = vmul.f32 %v849_v30, %v476_v16  ;;  %v489_v22 = vsel %vm363_vm0, %v481_v14, 0.0  ;;  %v556_v16 = vld [vmem:[#allocation2 + $0x10] sm:$0x1f] }
  0x59   : > { %v484_v7 = vmul.f32 %v851_v31, %v480_v5  ;;  %v486_v24 = vmul.f32 %v1010_v51, %v482_v18  ;;  %v492_v32 = vsel %vm363_vm0, %v482_v18, 0.0  ;;  %v557_v5 = vld [vmem:[#allocation2 + $0x40] sm:$0x1f] }
  0x5a   : > { %v487_v35 = vmul.f32 %v1014_v56, %v483_v20  ;;  %v490_v27 = vsel %vm363_vm0, %v483_v20, 0.0  ;;  %v495_v26 = vsel %vm363_vm0, %v485_v19, 0.0 }
  0x5b   : > { %v488_v21 = vmul.f32 %v1016_v57, %v484_v7  ;;  %v491_v28 = vadd.f32 %v490_v27, %v489_v22  ;;  %v493_v3 = vsel %vm363_vm0, %v484_v7, 0.0  ;;  %v498_v30 = vsel %vm363_vm0, %v486_v24, 0.0 }
  0x5c   : > { %v494_v31 = vadd.f32 %v493_v3, %v492_v32  ;;  %v496_v34 = vsel %vm363_vm0, %v487_v35, 0.0 }
  0x5d   : > { %v497_v37 = vadd.f32 %v496_v34, %v495_v26  ;;  %v499_v56 = vsel %vm363_vm0, %v488_v21, 0.0  ;;  %v526_v39 = vadd.f32 %v524_v29, %v491_v28  ;;  %v605_v29 = vld [vmem:[#allocation3 + $0x2] ss:$4 sm:$0x3] }
  0x5e   : > { %v500_v40 = vadd.f32 %v499_v56, %v498_v30  ;;  %v527_v41 = vadd.f32 %v525_v33, %v494_v31  ;;  %v580_v21 = vld [vmem:[#allocation3 + $0x1] ss:$4 sm:$0x3] }
  0x5f   : > { %v519_v42 = vadd.f32 %v517_v36, %v497_v37  ;;  %528 = vst [vmem:[#allocation2 + $0x58] sm:$0x1f] %v526_v39 }
  0x60   : > { %v520_v57 = vadd.f32 %v518_v38, %v500_v40  ;;  %529 = vst [vmem:[#allocation2 + $0x18] sm:$0x1f] %v527_v41 }
  0x61   : > { %521 = vst [vmem:[#allocation2 + $0x30] sm:$0x1f] %v519_v42 }
  0x62   : > { %522 = vst [vmem:[#allocation2] sm:$0x1f] %v520_v57 }
  0x92   : > { %v359_v43 = vpop.permute.xlu0 %358 }
  0x93   : > { %v361_v44 = vmul.f32 %v1008_v50, %v359_v43  ;;  %v362_v45 = vmul.f32 %v1010_v51, %v359_v43  ;;  %v538_v51 = vld [vmem:[#allocation2 + $0x8] sm:$0x1f] }
  0x95   : > { %v364_v46 = vsel %vm363_vm0, %v361_v44, 0.0  ;;  %v371_v47 = vsel %vm363_vm0, %v362_v45, 0.0 }
  0x96   : > { %v365_v48 = vrot.slane %v364_v46, 4  ;;  %v372_v49 = vrot.slane %v371_v47, 4 }
  0x98   : > { %v366_v52 = vadd.f32 %v365_v48, %v364_v46  ;;  %v373_v53 = vadd.f32 %v372_v49, %v371_v47 }
  0x9a   : > { %v367_v58 = vrot.slane %v366_v52, 2  ;;  %v374_v59 = vrot.slane %v373_v53, 2 }
  0x9c   : > { %v368_v60 = vadd.f32 %v367_v58, %v366_v52  ;;  %v375_v61 = vadd.f32 %v374_v59, %v373_v53 }
  0x9e   : > { %v369_v63 = vrot.slane %v368_v60, 1  ;;  %v376_v0 = vrot.slane %v375_v61, 1 }
  0xa0   : > { %v370_v50 = vadd.f32 %v369_v63, %v368_v60  ;;  %v377_v1 = vadd.f32 %v376_v0, %v375_v61 }
  0xa2   : > { %v540_v2 = vmul.f32 %v497_v37, %v370_v50  ;;  %v541_v12 = vmul.f32 %v500_v40, %v377_v1  ;;  %v549_v13 = vmul.f32 %v491_v28, %v370_v50  ;;  %v550_v14 = vmul.f32 %v494_v31, %v377_v1 }
  0xa3   : > { %v558_v18 = vmul.f32 %v1032_v17, %v370_v50  ;;  %v559_v19 = vmul.f32 %v1034_v6, %v377_v1  ;;  %v583_v20 = vcombine.low %v370_v50, %v377_v1 }
  0xa4   : > { %v542_v22 = vadd.f32 %v540_v2, %v538_v51  ;;  %v543_v7 = vadd.f32 %v541_v12, %v539_v4  ;;  %v551_v24 = vadd.f32 %v549_v13, %v547_v8  ;;  %v552_v32 = vadd.f32 %v550_v14, %v548_v10 }
  0xa5   : > { %v560_v35 = vadd.f32 %v558_v18, %v556_v16  ;;  %v561_v27 = vadd.f32 %v559_v19, %v557_v5  ;;  %v590_v26 = vrot.slane %v583_v20, %v589_v11  ;;  %v612_v9 = vrot.slane %v583_v20, %v988_v25 }
  0xa6   : > { %544 = vst [vmem:[#allocation2 + $0x8] sm:$0x1f] %v542_v22  ;;  %545 = vst [vmem:[#allocation2 + $0x38] sm:$0x1f] %v543_v7 }
  0xa7   : > { %553 = vst [vmem:[#allocation2 + $0x28] sm:$0x1f] %v551_v24  ;;  %554 = vst [vmem:[#allocation2 + $0x48] sm:$0x1f] %v552_v32  ;;  %v592_v17 = vmul.f32 %v978_v15, %v590_v26  ;;  %v619_v6 = vrot.slane %v612_v9, %v988_v25 }
  0xa8   : > { %562 = vst [vmem:[#allocation2 + $0x10] sm:$0x1f] %v560_v35  ;;  %563 = vst [vmem:[#allocation2 + $0x40] sm:$0x1f] %v561_v27 }
  0xa9   : > { %v600_v28 = vrot.slane %v592_v17, %v988_v25  ;;  %v621_v3 = vadd.f32 %v619_v6, %v605_v29 }
  0xab   : > { %v602_v30 = vadd.f32 %v600_v28, %v580_v21  ;;  %622 = vst.msk [vmem:[#allocation3 + $0x2] ss:$4 sm:$0x3] %vm1038_vm6, %v621_v3 }
  0xad   : > { %603 = vst.msk [vmem:[#allocation3 + $0x1] ss:$4 sm:$0x3] %vm1038_vm6, %v602_v30 }
  0xae PF: > { %v626_v33 = vld [vmem:[#allocation2 + $0x30] sm:$0x1f]  ;;  %v627_v31 = vld [vmem:[#allocation2] sm:$0x1f]  ;;  %vm638_vm7 = vcmask 1044480   ;;  %vm680_vm8 = vcmask 1042432  }
  0xaf   : > { %v639_v34 = vsel %vm638_vm7, %v626_v33, 0.0  ;;  %v640_v15 = vsel %vm638_vm7, %v627_v31, 0.0  ;;  %v630_v36 = vld [vmem:[#allocation2 + $0x50] sm:$0x1f]  ;;  %v631_v37 = vld [vmem:[#allocation2 + $0x20] sm:$0x1f] }
  0xb0   : > { %v641_v56 = vadd.f32 %v640_v15, %v639_v34  ;;  %v649_v25 = vsel %vm638_vm7, %v630_v36, 0.0  ;;  %v650_v38 = vsel %vm638_vm7, %v631_v37, 0.0  ;;  %v628_v39 = vld [vmem:[#allocation2 + $0x58] sm:$0x1f]  ;;  %v632_v57 = vld [vmem:[#allocation2 + $0x8] sm:$0x1f] }
  0xb1   : > { %v629_v40 = vld [vmem:[#allocation2 + $0x18] sm:$0x1f]  ;;  %v651_v41 = vadd.f32 %v650_v38, %v649_v25  ;;  %v644_v23 = vsel %vm638_vm7, %v628_v39, 0.0  ;;  %v654_v45 = vsel %vm638_vm7, %v632_v57, 0.0  ;;  %v634_v47 = vld [vmem:[#allocation2 + $0x28] sm:$0x1f] }
  0xb2   : > { %v645_v42 = vsel %vm638_vm7, %v629_v40, 0.0  ;;  %v633_v43 = vld [vmem:[#allocation2 + $0x38] sm:$0x1f]  ;;  %642 = vadd.xlane.f32.xlu0 %v641_v56  ;;  %v635_v48 = vld [vmem:[#allocation2 + $0x48] sm:$0x1f]  ;;  %v659_v52 = vsel %vm638_vm7, %v634_v47, 0.0 }
  0xb3   : > { %v646_v44 = vadd.f32 %v645_v42, %v644_v23  ;;  %v655_v46 = vsel %vm638_vm7, %v633_v43, 0.0  ;;  %652 = vadd.xlane.f32.xlu1 %v651_v41  ;;  %v660_v53 = vsel %vm638_vm7, %v635_v48, 0.0  ;;  %v636_v54 = vld [vmem:[#allocation2 + $0x10] sm:$0x1f]  ;;  %v637_v55 = vld [vmem:[#allocation2 + $0x40] sm:$0x1f] }
  0xb4   : > { %v656_v49 = vadd.f32 %v655_v46, %v654_v45  ;;  %v664_v58 = vsel %vm638_vm7, %v636_v54, 0.0  ;;  %v665_v59 = vsel %vm638_vm7, %v637_v55, 0.0  ;;  %v676_v60 = vld [vmem:[#allocation3] sm:$0x77]  ;;  %v661_v62 = vadd.f32 %v660_v53, %v659_v52 }
  0xb5   : > { %v678_v61 = vcombine.high %v676_v60, %v676_v60  ;;  %v666_v63 = vadd.f32 %v665_v59, %v664_v58  ;;  %v681_v0 = vsel %vm680_vm8, %v676_v60, 0.0  ;;  %vm669_vm9 = vcmask 4096  }
  0xb6   : > { %647 = vadd.xlane.f32.xlu0 %v646_v44  ;;  %vm686_vm10 = vcmask 2048  }
  0xb7   : > { %657 = vadd.xlane.f32.xlu1 %v656_v49  ;;  %v682_v50 = vsel %vm680_vm8, %v678_v61, 0.0 }
  0xb8   : > { %v683_v1 = vadd.f32 %v682_v50, %v681_v0 }
  0xba   : > { %662 = vadd.xlane.f32.xlu0 %v661_v62 }
  0xbb   : > { %667 = vadd.xlane.f32.xlu1 %v666_v63 }
  0xbe   : > { %684 = vadd.xlane.f32.xlu0 %v683_v1 }
 0x13b   : > { %v643_v51 = vpop.xlane.xlu0 %642 }
 0x13c   : > { %670 = vst.msk [vmem:[%s946_s26] sm:$0x1f] %vm669_vm9, %v643_v51  ;;  %v653_v4 = vpop.xlane.xlu1 %652 }
 0x13d   : > { %672 = vst.msk [vmem:[%s946_s26 + $0x10] sm:$0x1f] %vm669_vm9, %v653_v4 }
 0x13f   : > { %v648_v8 = vpop.xlane.xlu0 %647 }
 0x140   : > { %671 = vst.msk [vmem:[%s946_s26 + $0x8] sm:$0x1f] %vm669_vm9, %v648_v8  ;;  %v658_v10 = vpop.xlane.xlu1 %657 }
 0x141   : > { %673 = vst.msk [vmem:[%s946_s26 + $0x18] sm:$0x1f] %vm669_vm9, %v658_v10 }
 0x143   : > { %v663_v11 = vpop.xlane.xlu0 %662 }
 0x144   : > { %674 = vst.msk [vmem:[%s946_s26 + $0x20] sm:$0x1f] %vm669_vm9, %v663_v11  ;;  %v668_v2 = vpop.xlane.xlu1 %667 }
 0x145   : > { %675 = vst.msk [vmem:[%s946_s26 + $0x28] sm:$0x1f] %vm669_vm9, %v668_v2 }
 0x147   : > { %v685_v12 = vpop.xlane.xlu0 %684 }
 0x148   : > { %687 = vst.msk [vmem:[%s951_s29] sm:$0x7] %vm686_vm10, %v685_v12 }
 0x149 PF: > { %s15_s17 = sadd.s32 1, %s883_s17   ;;  %s1119_s15 = smov %s879_s16 }
 0x14a   : > { %p12_p8 = scmp.ge.s32.totalorder %s15_s17, 4   ;;  %s1120_s16 = smov %s1122_s18 }
 0x14c   :  { %14 = sbr.rel (!%p12_p8) target bundleno = 2 (0x2), region = 96 }

</bundles_post_ra>
